<compile_context>
chip_gen: v7x
topology: tpu7x:2x2x1
jax: 0.10.0
libtpu: 0.0.40
codegen_flags: <defaults>
</compile_context>

<pallas_src>
import jax
import jax.numpy as jnp
from jax.experimental import pallas as pl
from jax.experimental.pallas import tpu as pltpu


# ----------------------------------------------------------------------------
# Kernel: broadcast-add the shared (1, tn) noise row onto a (tm, tn) image tile
# (cast to f32 on the VPU, free under the DMA bottleneck) and clamp.
# ----------------------------------------------------------------------------
def _sap_kernel(img_ref, noise_ref, out_ref):
    x = img_ref[...].astype(jnp.float32)
    out_ref[...] = jnp.clip(x + noise_ref[...], -255.0, 255.0)


# ----------------------------------------------------------------------------
# Tile selection helpers.
# ----------------------------------------------------------------------------
_TILE_CAP_BYTES = 4 << 20   # per f32 output tile (double-buffered by Pallas)


def _divisors(n):
    out = set()
    i = 1
    while i * i <= n:
        if n % i == 0:
            out.add(i)
            out.add(n // i)
        i += 1
    return sorted(out)


def _choose_tiles(bc, p_pad, sublane):
    """Pick (tm, tn): lane-dense tn (multiple of 128 dividing p_pad, <= 8192),
    then tm as the largest divisor of bc (multiple of `sublane`, or bc itself)
    keeping the f32 output tile under _TILE_CAP_BYTES."""
    tn = 128
    for cand in (8192, 4096, 2048, 1024, 512, 256, 128):
        if cand <= p_pad and p_pad % cand == 0:
            tn = cand
            break

    cap_tm = max(sublane, _TILE_CAP_BYTES // (tn * 4))
    cands = [d for d in _divisors(bc) if d % sublane == 0 or d == bc]
    fit = [d for d in cands if d <= cap_tm]
    tm = max(fit) if fit else min(cands)

    # v7x megacore: make sure at least one "parallel" axis has >= 2 blocks.
    if bc // tm == 1 and p_pad // tn == 1:
        if tn >= 256:
            tn //= 2
        elif tm % (2 * sublane) == 0:
            tm //= 2
    return tm, tn


# ----------------------------------------------------------------------------
# Noise-map construction (wrapper-side): exact-count placement via a random
# permutation, mirroring torch.randperm + scatter in the reference.
# (Randomness comes from a jax.random key, so values are not bit-identical to
#  the torch module for a given torch seed — same distribution/semantics.)
# ----------------------------------------------------------------------------
def build_noise_row(key, H, W, salt_prob=0.01, pepper_prob=0.01):
    total = H * W
    n_plus = int(total * pepper_prob)    # first `pepper` indices -> +512 (as in reference)
    n_minus = int(total * salt_prob)     # last `salt` indices   -> -512 (as in reference)
    perm = jax.random.permutation(key, total)
    noise = jnp.zeros((total,), jnp.float32)
    if n_plus > 0:
        noise = noise.at[perm[:n_plus]].set(512.0)
    if n_minus > 0:
        noise = noise.at[perm[total - n_minus:]].set(-512.0)
    return noise.reshape(1, total)


def salt_and_pepper_attack(image, key, salt_prob=0.01, pepper_prob=0.01,
                           *, force_pallas=False):
    """image: (B, C, H, W). Returns clamp(image + noise, -255, 255) as f32."""
    B, C, H, W = image.shape
    BC, P = B * C, H * W

    noise_row = build_noise_row(key, H, W, salt_prob, pepper_prob)   # (1, P) f32

    # Tiny-problem fallback: pallas_call launch overhead dominates; XLA fuses
    # this elementwise op into a single mem-bound loop anyway.
    if not force_pallas and BC * P * 4 < (2 << 20):
        noisy = image.astype(jnp.float32) + noise_row.reshape(1, 1, H, W)
        return jnp.clip(noisy, -255.0, 255.0)

    img_flat = image.reshape(BC, P)                                  # native dtype

    # Pad the spatial axis up to a multiple of 128 so every tile is lane-dense.
    P_pad = ((P + 127) // 128) * 128
    if P_pad != P:
        img_flat = jnp.pad(img_flat, ((0, 0), (0, P_pad - P)))
        noise_row = jnp.pad(noise_row, ((0, 0), (0, P_pad - P)))

    itemsize = jnp.dtype(image.dtype).itemsize
    sublane = {4: 8, 2: 16, 1: 32}.get(itemsize, 8)
    tm, tn = _choose_tiles(BC, P_pad, sublane)

    # Grid: spatial blocks on the slow (outer) axis, row blocks on the fast
    # (inner) axis -> the noise block index is invariant over the inner loop.
    grid = (P_pad // tn, BC // tm)

    out = pl.pallas_call(
        _sap_kernel,
        out_shape=jax.ShapeDtypeStruct((BC, P_pad), jnp.float32),
        grid=grid,
        in_specs=[
            pl.BlockSpec((tm, tn), lambda j, i: (i, j)),   # image tile (native dtype)
            pl.BlockSpec((1, tn), lambda j, i: (0, j)),    # shared noise row (f32)
        ],
        out_specs=pl.BlockSpec((tm, tn), lambda j, i: (i, j)),
        compiler_params=pltpu.CompilerParams(
            dimension_semantics=("parallel", "parallel"),
            vmem_limit_bytes=48 << 20,
        ),
    )(img_flat, noise_row)

    if P_pad != P:
        out = out[:, :P]
    return out.reshape(B, C, H, W)


if __name__ == "__main__":
    key = jax.random.PRNGKey(0)
    k_img, k_noise = jax.random.split(key)

    # Small shapes consistent with the module: (batch=2, channels=4, 16x16).
    x = jax.random.uniform(k_img, (2, 4, 16, 16), dtype=jnp.float32)

    # Force the Pallas path so the kernel itself is exercised on this tiny demo.
    y = salt_and_pepper_attack(x, k_noise, salt_prob=0.01, pepper_prob=0.01,
                               force_pallas=True)
    jax.block_until_ready(y)

    # Pure-JAX reference (same key -> same permutation/noise map).
    noise_ref = build_noise_row(k_noise, 16, 16, 0.01, 0.01).reshape(1, 1, 16, 16)
    ref = jnp.clip(x.astype(jnp.float32) + noise_ref, -255.0, 255.0)

    assert y.shape == x.shape and y.dtype == jnp.float32
    assert bool(jnp.allclose(y, ref, atol=0.0, rtol=0.0))
    assert float(jnp.max(y)) <= 255.0 and float(jnp.min(y)) >= -255.0
    print("KERNEL_OK")
</pallas_src>

<mosaic_0001>
module attributes {stable_mosaic.version = 11 : i64} {
  func.func @_sap_kernel(%arg0: i32, %arg1: i32, %arg2: memref<8x128xf32, #tpu.memory_space<vmem>>, %arg3: memref<1x128xf32, #tpu.memory_space<vmem>>, %arg4: memref<8x128xf32, #tpu.memory_space<vmem>>) attributes {dimension_semantics = [#tpu.dimension_semantics<parallel>, #tpu.dimension_semantics<parallel>], iteration_bounds = array<i64: 2, 1>, scalar_prefetch = 0 : i64, scratch_operands = 0 : i64, tpu.core_type = #tpu.core_type<tc>, window_params = [{transform_indices = @transform_0, window_bounds = array<i64: 8, 128>}, {transform_indices = @transform_1, window_bounds = array<i64: 1, 128>}, {transform_indices = @transform_2, window_bounds = array<i64: 8, 128>}]} {
    %c0 = arith.constant 0 : index
    %c0_0 = arith.constant 0 : index
    %0 = vector.load %arg2[%c0, %c0_0] : memref<8x128xf32, #tpu.memory_space<vmem>>, vector<8x128xf32>
    %c0_1 = arith.constant 0 : index
    %c0_2 = arith.constant 0 : index
    %1 = vector.load %arg3[%c0_1, %c0_2] : memref<1x128xf32, #tpu.memory_space<vmem>>, vector<1x128xf32>
    %2 = vector.broadcast %1 : vector<1x128xf32> to vector<8x128xf32>
    %3 = arith.addf %0, %2 : vector<8x128xf32>
    %cst = arith.constant -2.550000e+02 : f32
    %cst_3 = arith.constant 2.550000e+02 : f32
    %4 = vector.broadcast %cst : f32 to vector<8x128xf32>
    %5 = arith.maximumf %4, %3 : vector<8x128xf32>
    %6 = vector.broadcast %cst_3 : f32 to vector<8x128xf32>
    %7 = arith.minimumf %6, %5 : vector<8x128xf32>
    %c0_4 = arith.constant 0 : index
    %c0_5 = arith.constant 0 : index
    %8 = vector.load %arg4[%c0_4, %c0_5] : memref<8x128xf32, #tpu.memory_space<vmem>>, vector<8x128xf32>
    tpu.vector_store %arg4[%c0_4, %c0_5], %7 {strides = array<i32>} : memref<8x128xf32, #tpu.memory_space<vmem>>, vector<8x128xf32>,
    return
  }
  func.func @transform_0(%arg0: i32, %arg1: i32) -> (i32, i32) {
    %c0_i32 = arith.constant 0 : i32
    return %arg1, %arg0 : i32, i32
  }
  func.func @transform_1(%arg0: i32, %arg1: i32) -> (i32, i32) {
    %c0_i32 = arith.constant 0 : i32
    %c0_i32_0 = arith.constant 0 : i32
    return %c0_i32, %arg0 : i32, i32
  }
  func.func @transform_2(%arg0: i32, %arg1: i32) -> (i32, i32) {
    %c0_i32 = arith.constant 0 : i32
    return %arg1, %arg0 : i32, i32
  }
}

</mosaic_0001>

<bundles_post_ra>
// kernel: tpu_custom_call.1
= control target key start
LH: loop header
LB: loop body
LE: loop exit
PB: predicated region body
PF: predicated region fallthrough
CT: control target
= control target key end

     0   :  { %7 = vsyncpa [#allocation3], 0  ;;  %s695_s0 = inlined_call_operand.hbm [shape: f32[8,256], index: 0, kind: input, shape index: {}]   ;;  %s696_s1 = inlined_call_operand.vmem [shape: f32[1,256], index: 1, kind: input, shape index: {}]   ;;  %s697_s2 = inlined_call_operand.hbm [shape: f32[8,256], index: 2, kind: output, shape index: {}]  }
   0x1   :  { %9 = vsyncpa [#allocation3 + $0x1], 0 }
   0x2   :  { %10 = vsyncpa [#allocation4], 0 }
   0x3   :  { %12 = vsyncpa [#allocation4 + $0x1], 0  ;;  %s518_s9 = smov 0   ;;  %s520_s10 = smov 0  }
   0x4   :  { %s522_s11 = smov 0   ;;  %s524_s12 = smov 0  }
   0x5   :  { %s526_s13 = smov 0   ;;  %s528_s14 = smov 0  }
   0x6 LB: > { %s310_s15 = sadd.s32 4294967295, %s499_s14   ;;  %s311_s16 = sadd.s32 4294967294, %s499_s14   ;;  %s499_s14 = sphi %s528_s14, %s18_s14   ;;  %s495_s13 = sphi %s526_s13, %s713_s13   ;;  %s491_s12 = sphi %s524_s12, %s712_s12   ;;  %s487_s11 = sphi %s522_s11, %s711_s11   ;;  %s483_s10 = sphi %s520_s10, %s710_s10   ;;  %s479_s9 = sphi %s518_s9, %s709_s9  }
   0x7   : > { %s30_s17 = sadd.s32 1, %s495_s13  ;;  %s39_s18 = sadd.s32 1, %s487_s11 }
   0x8   : > { %p32_p0 = scmp.ge.s32.totalorder %s30_s17, 2  ;;  %p46_p1 = scmp.ne.s32.totalorder %s487_s11, %s483_s10 }
   0x9   : > { %p47_p2 = scmp.eq.s32.totalorder %s499_s14, 0  ;;  %p52_p3 = scmp.ne.s32.totalorder %s483_s10, %s479_s9 }
   0xa   : > { %s715_s17 = smov (%p32_p0, %s30_s17), 0  ;;  %p53_p5 = scmp.eq.s32.totalorder %s310_s15, 0 }
   0xb   : > { %p559_p4 = por %p47_p2, %p46_p1  ;;  %s35_s20 = ssub.s32 %s495_s13, %s715_s17 }
   0xc   : > { %p104_p6 = scmp.eq.s32.totalorder %s310_s15, 1  ;;  %p37_p7 = scmp.eq.s32.totalorder %s35_s20, 0 }
   0xd   : > { %p565_p8 = por %p53_p5, %p52_p3  ;;  %p110_p10 = scmp.eq.s32.totalorder %s311_s16, 1 }
   0xe   : > { %p569_p9 = por %p104_p6, %p46_p1  ;;  %p337_p13 = scmp.lt.s32.totalorder %s499_s14, 2 }
   0xf   : > { %s574_s23 = scalar_select %p37_p7, %s487_s11, %s39_s18  }
  0x10   : > { %s701_s22 = scalar_select %p569_p9, 1, 0 }
  0x11   : > { %p576_p11 = por %p110_p10, %p52_p3  ;;  %s130_s25 = sand.u32 1, %s487_s11  }
  0x12   : > { %s314_s26 = sshll.u32 %s130_s25, 3  ;;  %s315_s27 = sshll.u32 %s495_s13, 7 }
  0x13   : > { %s702_s24 = scalar_select %p576_p11, 1, 0 }
  0x14   : > { %s587_s30 = scalar_lea.hbm %s695_s0, %s315_s27  ;;  %s134_s3 = scalar_lea.vmem [#allocation2], %s314_s26 }
  0x15   : > { %s143_s4 = sshll.u32 %s134_s3, 4  ;;  %p593_p0 = pnand %p337_p13, %p559_p4  ;;  %s589_s4 = int_to_ptr.vmem [resolvable:$true] %s143_s4 }
  0x16   : > { %s131_s6 = scalar_lea.sflag [#allocation3], %s130_s25  ;;  %s387_s7 = scalar_lea.hbm %s587_s30, 128 }
  0x17   : > { %p388_p3 = scmp.ne.s32.totalorder %s587_s30, %s387_s7  ;;  %p389_p5 = pneg %p593_p0 }
  0x18   : > { %s392_s16 = scalar_lea.hbm %s695_s0, 256  ;;  %p393_p4 = scmp.lt.u32.totalorder %s587_s30, %s695_s0 }
  0x19   : > { %p390_p6 = pnand %p389_p5, %p388_p3  ;;  %p394_p10 = scmp.lt.u32.totalorder %s392_s16, %s387_s7 }
  0x1a   : > { %p396_p12 = scmp.lt.u32.totalorder %s387_s7, %s587_s30 }
  0x1b   : > { %p391_p7 = pneg %p390_p6  ;;  %p395_p13 = por %p394_p10, %p393_p4 }
  0x1d   : > { %p397_p1 = por %p396_p12, %p395_p13 }
  0x1f   : > { %p398_p2 = pnand %p397_p1, %p391_p7 }
  0x21   : > { %401 = shalt.err (!%p398_p2)
}
  0x22   : > { %s402_s20 = scalar_lea.vmem %s589_s4, 128  ;;  %s501_s25 = smov [#allocation2]  }
  0x23   : > { %p403_p3 = scmp.ne.s32.totalorder %s589_s4, %s402_s20  ;;  %s407_s26 = sshll.u32 %s501_s25, 4  ;;  %s408_s26 = int_to_ptr.vmem [resolvable:$false] %s407_s26 }
  0x24   : > { %s409_s27 = scalar_lea.vmem %s408_s26, 256  ;;  %p410_p9 = scmp.lt.s32.totalorder %s589_s4, %s408_s26 }
  0x25   : > { %p405_p6 = pnand %p403_p3, %p389_p5  ;;  %p411_p4 = scmp.lt.s32.totalorder %s409_s27, %s402_s20 }
  0x27   : > { %p406_p11 = pneg %p405_p6  ;;  %p412_p10 = por %p411_p4, %p410_p9 }
  0x29   : > { %p413_p12 = pnand %p412_p10, %p406_p11 }
  0x2b   : > { %416 = shalt.err (!%p413_p12)
}
  0x2c   : > { %332 = dma.hbm_to_vmem [thread:$0]  (!%p593_p0), %s587_s30, 128, %s589_s4, %s131_s6  }
  0x2d   : > { %p704_p1 = scmp.lt.s32.totalorder %s499_s14, 3  ;;  %p705_p2 = scmp.ge.s32.totalorder %s499_s14, 1 }
  0x2f   : > { %p155_p5 = pnand %p705_p2, %p704_p1 }
  0x30   : > { %s629_s28 = sand.u32 (!%p155_p5), 1, %s483_s10  }
  0x31   : > { %158 = sbr.rel (%p155_p5) target bundleno = 85 (0x55), region = 28  ;;  %s317_s29 = sshll.u32 (!%p155_p5), %s629_s28, 3 }
  0x32   : > { %s161_s3 = scalar_lea.sflag (!%p155_p5), [#allocation3], %s629_s28  ;;  %s164_s7 = scalar_lea.vmem (!%p155_p5), [#allocation2], %s317_s29 }
  0x38   : > { %470 = dma.done.wait (%p565_p8), %s161_s3, 128  }
  0x39   : > { %472 = vsyncadd (%p565_p8), %s161_s3, 4294967168  ;;  %p188_p9 = scmp.lt.s32.totalorder %s491_s12, 1  ;;  %v191_v0 = vld [vmem:[%s164_s7] sm:$0xff]  ;;  %s187_s8 = scalar_lea.vmem [#allocation5], %s317_s29 }
  0x3a   : > { %s219_s15 = sshll.u32 %s187_s8, 4  ;;  %s322_s16 = sshll.u32 %s491_s12, 7  ;;  %s643_s15 = int_to_ptr.vmem [resolvable:$true] %s219_s15 }
  0x3b   : > { %s189_s30 = scalar_select %p188_p9, %s491_s12, 1 }
  0x3c   : > { %s648_s19 = scalar_lea.hbm %s697_s2, %s322_s16  ;;  %s204_s20 = scalar_lea.sflag [#allocation4], %s629_s28 }
  0x3d   : > { %s190_s6 = scalar_lea.vmem %s696_s1, %s189_s30  ;;  %s417_s25 = scalar_lea.vmem %s643_s15, 128 }
  0x3e   : > { %v319_v1 = vld [vmem:[%s190_s6] ss:$0 sm:$0xff]  ;;  %p418_p8 = scmp.ne.s32.totalorder %s643_s15, %s417_s25  ;;  %p706_p11 = scmp.ne.s32.totalorder %s701_s22, 0 }
  0x3f   : > { %v199_v2 = vadd.f32 %v319_v1, %v191_v0  ;;  %s502_s12 = smov [#allocation5]  }
  0x40   : > { %p419_p0 = pnand %p418_p8, %p706_p11  ;;  %s421_s26 = sshll.u32 %s502_s12, 4  ;;  %s422_s26 = int_to_ptr.vmem [resolvable:$false] %s421_s26 }
  0x41   : > { %v320_v3 = vclamps-f32 %v199_v2, 255.0  ;;  %s423_s27 = scalar_lea.vmem %s422_s26, 256  ;;  %p424_p13 = scmp.lt.s32.totalorder %s643_s15, %s422_s26 }
  0x42   : > { %p420_p7 = pneg %p419_p0  ;;  %p425_p3 = scmp.lt.s32.totalorder %s423_s27, %s417_s25 }
  0x43   : > { %202 = vst [vmem:[%s187_s8] sm:$0xff] %v320_v3 }
  0x44   : > { %p426_p6 = por %p425_p3, %p424_p13 }
  0x46   : > { %p427_p4 = pnand %p426_p6, %p420_p7 }
  0x48   : > { %430 = shalt.err (!%p427_p4)
}
  0x49   : > { %s431_s28 = scalar_lea.hbm %s648_s19, 128  ;;  %s435_s7 = scalar_lea.hbm %s697_s2, 256 }
  0x4a   : > { %p432_p10 = scmp.ne.s32.totalorder %s648_s19, %s431_s28  ;;  %p436_p2 = scmp.lt.u32.totalorder %s648_s19, %s697_s2 }
  0x4b   : > { %p437_p5 = scmp.lt.u32.totalorder %s435_s7, %s431_s28  ;;  %p439_p8 = scmp.lt.u32.totalorder %s431_s28, %s648_s19 }
  0x4c   : > { %p433_p12 = pnand %p432_p10, %p706_p11 }
  0x4d   : > { %p438_p9 = por %p437_p5, %p436_p2 }
  0x4e   : > { %p434_p1 = pneg %p433_p12 }
  0x4f   : > { %p440_p0 = por %p439_p8, %p438_p9 }
  0x51   : > { %p441_p7 = pnand %p440_p0, %p434_p1 }
  0x53   : > { %444 = shalt.err (!%p441_p7)
}
  0x54   : > { %327 = dma.vmem_to_hbm [thread:$0]  (%p706_p11), %s643_s15, 128, %s648_s19, %s204_s20  }
  0x55 PF: > { %s231_s5 = sand.u32 1, %s479_s9   ;;  %p707_p13 = scmp.ne.s32.totalorder %s702_s24, 0 }
  0x56   : > { %p708_p3 = scmp.ge.s32.totalorder %s499_s14, 2  ;;  %s232_s6 = scalar_lea.sflag [#allocation4], %s231_s5 }
  0x58   : > { %p334_p6 = pnand %p708_p3, %p707_p13 }
  0x5a   : > { %474 = dma.done.wait (!%p334_p6), %s232_s6, 128  }
  0x5b   : > { %476 = vsyncadd (!%p334_p6), %s232_s6, 4294967168  ;;  %s18_s14 = sadd.s32 1, %s499_s14   ;;  %s709_s9 = smov %s483_s10 }
  0x5c   : > { %p15_p4 = scmp.ge.s32.totalorder %s18_s14, 4   ;;  %s710_s10 = smov %s487_s11 }
  0x5d   : > { %s711_s11 = smov %s574_s23  ;;  %s712_s12 = smov %s495_s13 }
  0x5e   : > { %s713_s13 = smov %s715_s17  ;;  %17 = sbr.rel (!%p15_p4) target bundleno = 6 (0x6), region = 76 }
  0x65   :  { %237 = vsyncpa [#allocation3], 1 }
  0x66   :  { %239 = vsyncpa [#allocation3 + $0x1], 1 }
  0x67   :  { %240 = vsyncpa [#allocation4], 1 }
  0x68   :  { %242 = vsyncpa [#allocation4 + $0x1], 1 }

</bundles_post_ra>
